<compile_context>
chip_gen: v7x
topology: tpu7x:2x2x1
jax: 0.10.0
libtpu: 0.0.40
codegen_flags: <defaults>
</compile_context>

<pallas_src>
import jax
import jax.numpy as jnp
from jax.experimental import pallas as pl
from jax.experimental.pallas import tpu as pltpu

LN_EPS = 1e-5


def _seq_tile(n: int, target: int = 128) -> int:
    """Sequence tile: `target` if it divides n, otherwise the full length
    (a full-extent block is always a legal BlockSpec dimension)."""
    if n <= target or n % target != 0:
        return n
    return target


def _make_ln_qkv_kernel(tn: int, heads: int, dh: int, scale: float):
    def kernel(x_ref, g_ref, b_ref, wq_ref, wk_ref, wv_ref, q_ref, k_ref, v_ref):
        # ---- LayerNorm (f32 stats, biased variance == nn.LayerNorm) ----
        x = x_ref[0].astype(jnp.float32)                     # (tn, D)
        mu = jnp.mean(x, axis=-1, keepdims=True)
        xc = x - mu
        var = jnp.mean(xc * xc, axis=-1, keepdims=True)
        xn = xc * jax.lax.rsqrt(var + LN_EPS)
        xn = xn * g_ref[...].astype(jnp.float32) + b_ref[...].astype(jnp.float32)
        xn = xn.astype(wq_ref.dtype)

        # ---- QKV projection: three (tn,D)x(D,D) matmuls (same FLOPs as one
        #      (D,3D) matmul, avoids in-kernel lane-axis slicing of qkv) ----
        q = jnp.dot(xn, wq_ref[...], preferred_element_type=jnp.float32) * scale
        k = jnp.dot(xn, wk_ref[...], preferred_element_type=jnp.float32)
        v = jnp.dot(xn, wv_ref[...], preferred_element_type=jnp.float32)

        def to_heads(t):                                     # (tn, D) -> (H, tn, dh)
            return t.reshape(tn, heads, dh).transpose(1, 0, 2)

        q_ref[0] = to_heads(q).astype(q_ref.dtype)
        k_ref[0] = to_heads(k).astype(k_ref.dtype)
        v_ref[0] = to_heads(v).astype(v_ref.dtype)

    return kernel


def _make_flash_kernel(tq: int, heads: int, dh: int):
    D = heads * dh

    def kernel(q_ref, k_ref, v_ref, wout_ref, bout_ref, o_ref, m_sc, l_sc, acc_sc):
        ki = pl.program_id(2)

        @pl.when(ki == 0)
        def _():
            m_sc[...] = jnp.full_like(m_sc, -jnp.inf)
            l_sc[...] = jnp.zeros_like(l_sc)
            acc_sc[...] = jnp.zeros_like(acc_sc)

        q = q_ref[0]                                         # (H, tq, dh), pre-scaled
        k = k_ref[0]                                         # (H, tk, dh)
        v = v_ref[0]                                         # (H, tk, dh)

        # Batched over heads; contracts dh of both operands -> no k.T relayout.
        s = jnp.einsum("hqd,hkd->hqk", q, k,
                       preferred_element_type=jnp.float32)   # (H, tq, tk) f32

        # ---- online softmax update ----
        m_prev = m_sc[...]
        m_new = jnp.maximum(m_prev, jnp.max(s, axis=-1, keepdims=True))
        alpha = jnp.exp(m_prev - m_new)
        p = jnp.exp(s - m_new)
        l_sc[...] = alpha * l_sc[...] + jnp.sum(p, axis=-1, keepdims=True)
        acc_sc[...] = alpha * acc_sc[...] + jnp.einsum(
            "hqk,hkd->hqd", p.astype(v.dtype), v,
            preferred_element_type=jnp.float32)
        m_sc[...] = m_new

        # ---- finalize: normalize, merge heads, output projection ----
        @pl.when(ki == pl.num_programs(2) - 1)
        def _():
            inv_l = pl.reciprocal(l_sc[...], approx=True)    # EUP slot (cheap)
            out = acc_sc[...] * inv_l                        # (H, tq, dh)
            merged = out.transpose(1, 0, 2).reshape(tq, D)   # 'h q d -> q (h d)'
            merged = merged.astype(wout_ref.dtype)
            proj = jnp.dot(merged, wout_ref[...],
                           preferred_element_type=jnp.float32)
            proj = proj + bout_ref[...].astype(jnp.float32)
            o_ref[0] = proj.astype(o_ref.dtype)              # lane-dense (tq, D) store

    return kernel


def attention_pallas(x, gamma, beta, wqkv, wout, bout, *, heads: int):
    B, N, D = x.shape
    assert D % heads == 0, "dim must be divisible by heads"
    dh = D // heads
    scale = dh ** (-0.5)

    tn = _seq_tile(N)   # LN/QKV tile
    tq = _seq_tile(N)   # query tile
    tk = _seq_tile(N)   # kv tile

    # Lane-dense 2-D parameter layouts; split Wqkv once in plain JAX (free).
    gamma2 = gamma.reshape(1, D)
    beta2 = beta.reshape(1, D)
    bout2 = bout.reshape(1, D)
    wq = wqkv[:, 0 * D:1 * D]
    wk = wqkv[:, 1 * D:2 * D]
    wv = wqkv[:, 2 * D:3 * D]

    itm = jnp.dtype(x.dtype).itemsize

    # ---------------- pass 1: LayerNorm + QKV projection ----------------
    qkv_cost = pl.CostEstimate(
        flops=6 * B * N * D * D,
        transcendentals=B * N,
        bytes_accessed=itm * (4 * B * N * D + 3 * D * D + 3 * D))
    q, k, v = pl.pallas_call(
        _make_ln_qkv_kernel(tn, heads, dh, scale),
        out_shape=(
            jax.ShapeDtypeStruct((B, heads, N, dh), x.dtype),
            jax.ShapeDtypeStruct((B, heads, N, dh), x.dtype),
            jax.ShapeDtypeStruct((B, heads, N, dh), x.dtype),
        ),
        grid_spec=pltpu.PrefetchScalarGridSpec(
            num_scalar_prefetch=0,
            grid=(B, N // tn),
            in_specs=[
                pl.BlockSpec((1, tn, D), lambda b, i: (b, i, 0)),     # x
                pl.BlockSpec((1, D), lambda b, i: (0, 0)),            # gamma
                pl.BlockSpec((1, D), lambda b, i: (0, 0)),            # beta
                pl.BlockSpec((D, D), lambda b, i: (0, 0)),            # Wq
                pl.BlockSpec((D, D), lambda b, i: (0, 0)),            # Wk
                pl.BlockSpec((D, D), lambda b, i: (0, 0)),            # Wv
            ],
            out_specs=(
                pl.BlockSpec((1, heads, tn, dh), lambda b, i: (b, 0, i, 0)),
                pl.BlockSpec((1, heads, tn, dh), lambda b, i: (b, 0, i, 0)),
                pl.BlockSpec((1, heads, tn, dh), lambda b, i: (b, 0, i, 0)),
            ),
        ),
        compiler_params=pltpu.CompilerParams(
            dimension_semantics=("parallel", "parallel")),
        cost_estimate=qkv_cost,
    )(x, gamma2, beta2, wq, wk, wv)

    # -------- pass 2: flash attention (online softmax) + out projection --------
    attn_cost = pl.CostEstimate(
        flops=4 * B * heads * N * N * dh + 2 * B * N * D * D,
        transcendentals=B * heads * N * N,
        bytes_accessed=itm * (B * N * D * (2 + 2 * (N // tq)) + D * D + D))
    out = pl.pallas_call(
        _make_flash_kernel(tq, heads, dh),
        out_shape=jax.ShapeDtypeStruct((B, N, D), x.dtype),
        grid_spec=pltpu.PrefetchScalarGridSpec(
            num_scalar_prefetch=0,
            grid=(B, N // tq, N // tk),
            in_specs=[
                pl.BlockSpec((1, heads, tq, dh), lambda b, qi, ki: (b, 0, qi, 0)),  # q
                pl.BlockSpec((1, heads, tk, dh), lambda b, qi, ki: (b, 0, ki, 0)),  # k
                pl.BlockSpec((1, heads, tk, dh), lambda b, qi, ki: (b, 0, ki, 0)),  # v
                pl.BlockSpec((D, D), lambda b, qi, ki: (0, 0)),                     # Wout
                pl.BlockSpec((1, D), lambda b, qi, ki: (0, 0)),                     # bout
            ],
            out_specs=pl.BlockSpec((1, tq, D), lambda b, qi, ki: (b, qi, 0)),
            scratch_shapes=[
                pltpu.VMEM((heads, tq, 1), jnp.float32),    # running max  m
                pltpu.VMEM((heads, tq, 1), jnp.float32),    # running sum  l
                pltpu.VMEM((heads, tq, dh), jnp.float32),   # running acc  (unnormalized out)
            ],
        ),
        compiler_params=pltpu.CompilerParams(
            dimension_semantics=("parallel", "parallel", "arbitrary")),
        cost_estimate=attn_cost,
    )(q, k, v, wout, bout2)

    return out


def attention_ref(x, gamma, beta, wqkv, wout, bout, *, heads: int):
    """Plain-JAX reference (mirrors the PyTorch forward, dropout=0)."""
    B, N, D = x.shape
    dh = D // heads
    scale = dh ** (-0.5)
    xf = x.astype(jnp.float32)
    mu = jnp.mean(xf, axis=-1, keepdims=True)
    var = jnp.mean((xf - mu) ** 2, axis=-1, keepdims=True)
    xn = (xf - mu) / jnp.sqrt(var + LN_EPS) * gamma + beta
    qkv = xn @ wqkv
    q, k, v = jnp.split(qkv, 3, axis=-1)

    def to_heads(t):
        return t.reshape(B, N, heads, dh).transpose(0, 2, 1, 3)   # (B, H, N, dh)

    q, k, v = map(to_heads, (q, k, v))
    dots = jnp.einsum("bhnd,bhmd->bhnm", q, k) * scale
    attn = jax.nn.softmax(dots, axis=-1)
    out = jnp.einsum("bhnm,bhmd->bhnd", attn, v)
    out = out.transpose(0, 2, 1, 3).reshape(B, N, D)
    return out @ wout + bout


if __name__ == "__main__":
    def run_case(B, N, D, H):
        key = jax.random.PRNGKey(0)
        kx, kq, ko, kb, kg, kbe = jax.random.split(key, 6)
        x = jax.random.normal(kx, (B, N, D), dtype=jnp.float32)
        gamma = 1.0 + 0.1 * jax.random.normal(kg, (D,), jnp.float32)
        beta = 0.1 * jax.random.normal(kbe, (D,), jnp.float32)
        # Stored as (in, out) so the kernel does x @ W (equiv. to PyTorch x @ W.T).
        wqkv = jax.random.normal(kq, (D, 3 * D), jnp.float32) * (1.0 / jnp.sqrt(D))
        wout = jax.random.normal(ko, (D, D), jnp.float32) * (1.0 / jnp.sqrt(D))
        bout = jax.random.normal(kb, (D,), jnp.float32) * 0.02

        out = jax.block_until_ready(
            attention_pallas(x, gamma, beta, wqkv, wout, bout, heads=H))
        ref = attention_ref(x, gamma, beta, wqkv, wout, bout, heads=H)
        assert out.shape == (B, N, D)
        err = jnp.max(jnp.abs(out - ref))
        # Tolerance accounts for the approx (EUP) reciprocal in the softmax denom.
        assert jnp.allclose(out, ref, atol=2e-3, rtol=2e-3), (
            f"max err {err} at shape {(B, N, D, H)}")

    # Small shape consistent with the module (single-tile path).
    run_case(B=2, N=8, D=32, H=8)
    # Larger shape exercising the multi-tile online-softmax (flash) path.
    run_case(B=2, N=256, D=128, H=4)

    print("KERNEL_OK")
</pallas_src>

<mosaic_0001>
module attributes {stable_mosaic.version = 11 : i64} {
  func.func @kernel(%arg0: i32, %arg1: i32, %arg2: memref<1x8x32xf32, #tpu.memory_space<vmem>>, %arg3: memref<1x32xf32, #tpu.memory_space<vmem>>, %arg4: memref<1x32xf32, #tpu.memory_space<vmem>>, %arg5: memref<32x32xf32, #tpu.memory_space<vmem>>, %arg6: memref<32x32xf32, #tpu.memory_space<vmem>>, %arg7: memref<32x32xf32, #tpu.memory_space<vmem>>, %arg8: memref<1x8x8x4xf32, #tpu.memory_space<vmem>>, %arg9: memref<1x8x8x4xf32, #tpu.memory_space<vmem>>, %arg10: memref<1x8x8x4xf32, #tpu.memory_space<vmem>>) attributes {dimension_semantics = [#tpu.dimension_semantics<parallel>, #tpu.dimension_semantics<parallel>], iteration_bounds = array<i64: 2, 1>, scalar_prefetch = 0 : i64, scratch_operands = 0 : i64, tpu.core_type = #tpu.core_type<tc>, window_params = [{transform_indices = @transform_0, window_bounds = array<i64: 1, 8, 32>}, {pipeline_mode = #tpu.pipeline_mode<synchronous>, transform_indices = @transform_1, window_bounds = array<i64: 1, 32>}, {pipeline_mode = #tpu.pipeline_mode<synchronous>, transform_indices = @transform_2, window_bounds = array<i64: 1, 32>}, {pipeline_mode = #tpu.pipeline_mode<synchronous>, transform_indices = @transform_3, window_bounds = array<i64: 32, 32>}, {pipeline_mode = #tpu.pipeline_mode<synchronous>, transform_indices = @transform_4, window_bounds = array<i64: 32, 32>}, {pipeline_mode = #tpu.pipeline_mode<synchronous>, transform_indices = @transform_5, window_bounds = array<i64: 32, 32>}, {transform_indices = @transform_6, window_bounds = array<i64: 1, 8, 8, 4>}, {transform_indices = @transform_7, window_bounds = array<i64: 1, 8, 8, 4>}, {transform_indices = @transform_8, window_bounds = array<i64: 1, 8, 8, 4>}]} {
    %c0 = arith.constant 0 : index
    %c0_0 = arith.constant 0 : index
    %c0_1 = arith.constant 0 : index
    %0 = vector.load %arg2[%c0, %c0_0, %c0_1] : memref<1x8x32xf32, #tpu.memory_space<vmem>>, vector<1x8x32xf32>
    %1 = vector.shape_cast %0 : vector<1x8x32xf32> to vector<8x32xf32>
    %cst = arith.constant dense<0.000000e+00> : vector<8xf32>
    %2 = vector.multi_reduction <add>, %1, %cst [1] : vector<8x32xf32> to vector<8xf32>
    %3 = vector.shape_cast %2 : vector<8xf32> to vector<8x1xf32>
    %cst_2 = arith.constant 3.200000e+01 : f32
    %4 = vector.broadcast %cst_2 : f32 to vector<8x1xf32>
    %5 = arith.divf %3, %4 : vector<8x1xf32>
    %6 = vector.broadcast %5 : vector<8x1xf32> to vector<8x32xf32>
    %7 = arith.subf %1, %6 : vector<8x32xf32>
    %8 = arith.mulf %7, %7 : vector<8x32xf32>
    %cst_3 = arith.constant dense<0.000000e+00> : vector<8xf32>
    %9 = vector.multi_reduction <add>, %8, %cst_3 [1] : vector<8x32xf32> to vector<8xf32>
    %10 = vector.shape_cast %9 : vector<8xf32> to vector<8x1xf32>
    %cst_4 = arith.constant 3.200000e+01 : f32
    %11 = vector.broadcast %cst_4 : f32 to vector<8x1xf32>
    %12 = arith.divf %10, %11 : vector<8x1xf32>
    %cst_5 = arith.constant 9.99999974E-6 : f32
    %13 = vector.broadcast %cst_5 : f32 to vector<8x1xf32>
    %14 = arith.addf %12, %13 : vector<8x1xf32>
    %15 = math.rsqrt %14 : vector<8x1xf32>
    %16 = vector.broadcast %15 : vector<8x1xf32> to vector<8x32xf32>
    %17 = arith.mulf %7, %16 : vector<8x32xf32>
    %c0_6 = arith.constant 0 : index
    %c0_7 = arith.constant 0 : index
    %18 = vector.load %arg3[%c0_6, %c0_7] : memref<1x32xf32, #tpu.memory_space<vmem>>, vector<1x32xf32>
    %19 = vector.broadcast %18 : vector<1x32xf32> to vector<8x32xf32>
    %20 = arith.mulf %17, %19 : vector<8x32xf32>
    %c0_8 = arith.constant 0 : index
    %c0_9 = arith.constant 0 : index
    %21 = vector.load %arg4[%c0_8, %c0_9] : memref<1x32xf32, #tpu.memory_space<vmem>>, vector<1x32xf32>
    %22 = vector.broadcast %21 : vector<1x32xf32> to vector<8x32xf32>
    %23 = arith.addf %20, %22 : vector<8x32xf32>
    %c0_10 = arith.constant 0 : index
    %c0_11 = arith.constant 0 : index
    %24 = vector.load %arg5[%c0_10, %c0_11] : memref<32x32xf32, #tpu.memory_space<vmem>>, vector<32x32xf32>
    %cst_12 = arith.constant dense<0.000000e+00> : vector<8x32xf32>
    %25 = tpu.matmul %23, %24, %cst_12 {dimension_numbers = #tpu.dot_dimension_numbers<[1], [0], [0], [1], [0, 0, 1, 1], [], []>} : vector<8x32xf32>, vector<32x32xf32>, vector<8x32xf32> -> vector<8x32xf32>
    %cst_13 = arith.constant 5.000000e-01 : f32
    %26 = vector.broadcast %cst_13 : f32 to vector<8x32xf32>
    %27 = arith.mulf %25, %26 : vector<8x32xf32>
    %c0_14 = arith.constant 0 : index
    %c0_15 = arith.constant 0 : index
    %28 = vector.load %arg6[%c0_14, %c0_15] : memref<32x32xf32, #tpu.memory_space<vmem>>, vector<32x32xf32>
    %cst_16 = arith.constant dense<0.000000e+00> : vector<8x32xf32>
    %29 = tpu.matmul %23, %28, %cst_16 {dimension_numbers = #tpu.dot_dimension_numbers<[1], [0], [0], [1], [0, 0, 1, 1], [], []>} : vector<8x32xf32>, vector<32x32xf32>, vector<8x32xf32> -> vector<8x32xf32>
    %c0_17 = arith.constant 0 : index
    %c0_18 = arith.constant 0 : index
    %30 = vector.load %arg7[%c0_17, %c0_18] : memref<32x32xf32, #tpu.memory_space<vmem>>, vector<32x32xf32>
    %cst_19 = arith.constant dense<0.000000e+00> : vector<8x32xf32>
    %31 = tpu.matmul %23, %30, %cst_19 {dimension_numbers = #tpu.dot_dimension_numbers<[1], [0], [0], [1], [0, 0, 1, 1], [], []>} : vector<8x32xf32>, vector<32x32xf32>, vector<8x32xf32> -> vector<8x32xf32>
    %32 = vector.shape_cast %27 : vector<8x32xf32> to vector<8x8x4xf32>
    %33 = tpu.transpose %32, [1, 0, 2] : vector<8x8x4xf32> -> vector<8x8x4xf32>
    %c0_20 = arith.constant 0 : index
    %c0_21 = arith.constant 0 : index
    %c0_22 = arith.constant 0 : index
    %c0_23 = arith.constant 0 : index
    %34 = vector.load %arg8[%c0_20, %c0_21, %c0_22, %c0_23] : memref<1x8x8x4xf32, #tpu.memory_space<vmem>>, vector<1x8x8x4xf32>
    %35 = vector.shape_cast %34 : vector<1x8x8x4xf32> to vector<8x8x4xf32>
    %36 = vector.shape_cast %33 : vector<8x8x4xf32> to vector<1x8x8x4xf32>
    tpu.vector_store %arg8[%c0_20, %c0_21, %c0_22, %c0_23], %36 {strides = array<i32>} : memref<1x8x8x4xf32, #tpu.memory_space<vmem>>, vector<1x8x8x4xf32>,
    %37 = vector.shape_cast %29 : vector<8x32xf32> to vector<8x8x4xf32>
    %38 = tpu.transpose %37, [1, 0, 2] : vector<8x8x4xf32> -> vector<8x8x4xf32>
    %c0_24 = arith.constant 0 : index
    %c0_25 = arith.constant 0 : index
    %c0_26 = arith.constant 0 : index
    %c0_27 = arith.constant 0 : index
    %39 = vector.load %arg9[%c0_24, %c0_25, %c0_26, %c0_27] : memref<1x8x8x4xf32, #tpu.memory_space<vmem>>, vector<1x8x8x4xf32>
    %40 = vector.shape_cast %39 : vector<1x8x8x4xf32> to vector<8x8x4xf32>
    %41 = vector.shape_cast %38 : vector<8x8x4xf32> to vector<1x8x8x4xf32>
    tpu.vector_store %arg9[%c0_24, %c0_25, %c0_26, %c0_27], %41 {strides = array<i32>} : memref<1x8x8x4xf32, #tpu.memory_space<vmem>>, vector<1x8x8x4xf32>,
    %42 = vector.shape_cast %31 : vector<8x32xf32> to vector<8x8x4xf32>
    %43 = tpu.transpose %42, [1, 0, 2] : vector<8x8x4xf32> -> vector<8x8x4xf32>
    %c0_28 = arith.constant 0 : index
    %c0_29 = arith.constant 0 : index
    %c0_30 = arith.constant 0 : index
    %c0_31 = arith.constant 0 : index
    %44 = vector.load %arg10[%c0_28, %c0_29, %c0_30, %c0_31] : memref<1x8x8x4xf32, #tpu.memory_space<vmem>>, vector<1x8x8x4xf32>
    %45 = vector.shape_cast %44 : vector<1x8x8x4xf32> to vector<8x8x4xf32>
    %46 = vector.shape_cast %43 : vector<8x8x4xf32> to vector<1x8x8x4xf32>
    tpu.vector_store %arg10[%c0_28, %c0_29, %c0_30, %c0_31], %46 {strides = array<i32>} : memref<1x8x8x4xf32, #tpu.memory_space<vmem>>, vector<1x8x8x4xf32>,
    return
  }
  func.func @transform_0(%arg0: i32, %arg1: i32) -> (i32, i32, i32) {
    %c0_i32 = arith.constant 0 : i32
    %c0_i32_0 = arith.constant 0 : i32
    return %arg0, %arg1, %c0_i32 : i32, i32, i32
  }
  func.func @transform_1(%arg0: i32, %arg1: i32) -> (i32, i32) {
    %c0_i32 = arith.constant 0 : i32
    %c0_i32_0 = arith.constant 0 : i32
    %c0_i32_1 = arith.constant 0 : i32
    return %c0_i32, %c0_i32_0 : i32, i32
  }
  func.func @transform_2(%arg0: i32, %arg1: i32) -> (i32, i32) {
    %c0_i32 = arith.constant 0 : i32
    %c0_i32_0 = arith.constant 0 : i32
    %c0_i32_1 = arith.constant 0 : i32
    return %c0_i32, %c0_i32_0 : i32, i32
  }
  func.func @transform_3(%arg0: i32, %arg1: i32) -> (i32, i32) {
    %c0_i32 = arith.constant 0 : i32
    %c0_i32_0 = arith.constant 0 : i32
    %c0_i32_1 = arith.constant 0 : i32
    return %c0_i32, %c0_i32_0 : i32, i32
  }
  func.func @transform_4(%arg0: i32, %arg1: i32) -> (i32, i32) {
    %c0_i32 = arith.constant 0 : i32
    %c0_i32_0 = arith.constant 0 : i32
    %c0_i32_1 = arith.constant 0 : i32
    return %c0_i32, %c0_i32_0 : i32, i32
  }
  func.func @transform_5(%arg0: i32, %arg1: i32) -> (i32, i32) {
    %c0_i32 = arith.constant 0 : i32
    %c0_i32_0 = arith.constant 0 : i32
    %c0_i32_1 = arith.constant 0 : i32
    return %c0_i32, %c0_i32_0 : i32, i32
  }
  func.func @transform_6(%arg0: i32, %arg1: i32) -> (i32, i32, i32, i32) {
    %c0_i32 = arith.constant 0 : i32
    %c0_i32_0 = arith.constant 0 : i32
    %c0_i32_1 = arith.constant 0 : i32
    return %arg0, %c0_i32, %arg1, %c0_i32_0 : i32, i32, i32, i32
  }
  func.func @transform_7(%arg0: i32, %arg1: i32) -> (i32, i32, i32, i32) {
    %c0_i32 = arith.constant 0 : i32
    %c0_i32_0 = arith.constant 0 : i32
    %c0_i32_1 = arith.constant 0 : i32
    return %arg0, %c0_i32, %arg1, %c0_i32_0 : i32, i32, i32, i32
  }
  func.func @transform_8(%arg0: i32, %arg1: i32) -> (i32, i32, i32, i32) {
    %c0_i32 = arith.constant 0 : i32
    %c0_i32_0 = arith.constant 0 : i32
    %c0_i32_1 = arith.constant 0 : i32
    return %arg0, %c0_i32, %arg1, %c0_i32_0 : i32, i32, i32, i32
  }
}

</mosaic_0001>

<bundles_post_ra>
// kernel: tpu_custom_call.1
= control target key start
LH: loop header
LB: loop body
LE: loop exit
PB: predicated region body
PF: predicated region fallthrough
CT: control target
= control target key end

     0   :  { %s2709_s0 = inlined_call_operand.hbm [shape: f32[2,8,32], index: 0, kind: input, shape index: {}]   ;;  %s2710_s1 = inlined_call_operand.vmem [shape: f32[1,32], index: 1, kind: input, shape index: {}]   ;;  %s2711_s2 = inlined_call_operand.vmem [shape: f32[1,32], index: 2, kind: input, shape index: {}]   ;;  %s2712_s3 = inlined_call_operand.hbm [shape: f32[32,32], index: 3, kind: input, shape index: {}]   ;;  %s2713_s4 = inlined_call_operand.hbm [shape: f32[32,32], index: 4, kind: input, shape index: {}]   ;;  %s2714_s5 = inlined_call_operand.hbm [shape: f32[32,32], index: 5, kind: input, shape index: {}]   ;;  %s2715_s6 = inlined_call_operand.vmem [shape: f32[2,8,8,4], index: 6, kind: output, shape index: {0}]   ;;  %s2716_s7 = inlined_call_operand.vmem [shape: f32[2,8,8,4], index: 7, kind: output, shape index: {1}]   ;;  %s2717_s8 = inlined_call_operand.vmem [shape: f32[2,8,8,4], index: 8, kind: output, shape index: {2}]  }
   0x1   :  { %2722 = sst [smem:[#allocation12_spill]] %s2715_s6 }
   0x2   :  { %2723 = sst [smem:[#allocation13_spill]] %s2717_s8 }
   0x3   :  { %14 = vsyncpa [#allocation3], 0 }
   0x4   :  { %16 = vsyncpa [#allocation3 + $0x1], 0 }
   0x5   :  { %17 = vsyncpa [#allocation5], 0 }
   0x6   :  { %18 = vsyncpa [#allocation8], 0  ;;  %s2268_s27 = smov 0   ;;  %s2270_s28 = smov 0  }
   0x7   :  { %s2272_s29 = smov 0   ;;  %s2274_s30 = smov 0  }
   0x8   :  { %s2276_s9 = smov 0   ;;  %s2278_s10 = smov 0  }
   0x9 LB: > { %s1809_s11 = sadd.s32 4294967295, %s2203_s10   ;;  %p58_p0 = scmp.ne.s32.totalorder %s2187_s28, %s2183_s27  ;;  %s2203_s10 = sphi %s2278_s10, %s24_s10   ;;  %s2199_s9 = sphi %s2276_s9, %s2740_s9   ;;  %s2195_s30 = sphi %s2274_s30, %s2739_s30   ;;  %s2191_s29 = sphi %s2272_s29, %s2738_s29   ;;  %s2187_s28 = sphi %s2270_s28, %s2737_s28   ;;  %s2183_s27 = sphi %s2268_s27, %s2736_s27  }
   0xa   : > { %p2298_p1 = scmp.eq.s32.totalorder %s1809_s11, 0  ;;  %p1811_p2 = scmp.ge.s32.totalorder %s2203_s10, 1 }
   0xb   : > { %p258_p3 = scmp.lt.s32.totalorder %s2203_s10, 3  ;;  %s2205_s15 = smov [#allocation4]  }
   0xc   : > { %s2724_s12 = scalar_select %p2298_p1, 1, 0 }
   0xd   : > { %p2306_p4 = por %p2298_p1, %p58_p0  ;;  %p2310_p5 = pnand %p1811_p2, %p258_p3 }
   0xe   : > { %s276_s16 = sshll.u32 %s2205_s15, 4  ;;  %s2206_s18 = smov [#allocation6]   ;;  %s2314_s16 = int_to_ptr.vmem [resolvable:$true] %s276_s16 }
   0xf   : > { %s2725_s13 = scalar_select %p2306_p4, 1, 0 }
  0x10   : > { %s2726_s14 = scalar_select %p2310_p5, 1, 0 }
  0x11   : > { %p1943_p6 = pneg %p2310_p5  ;;  %s289_s19 = sshll.u32 %s2206_s18, 4  ;;  %s2324_s19 = int_to_ptr.vmem [resolvable:$true] %s289_s19 }
  0x12   : > { %s2207_s20 = smov [#allocation7]   ;;  %s2031_s24 = scalar_lea.hbm %s2712_s3, 512 }
  0x13   : > { %p2320_p7 = pnand %p1943_p6, %p2298_p1  ;;  %s2326_s21 = sshll.u32 %s2207_s20, 4  ;;  %s303_s21 = int_to_ptr.vmem [resolvable:$true] %s2326_s21 }
  0x14   : > { %p2032_p8 = scmp.ne.s32.totalorder %s2712_s3, %s2031_s24  ;;  %p2038_p12 = scmp.lt.u32.totalorder %s2031_s24, %s2712_s3 }
  0x15   : > { %p2336_p9 = pneg %p2320_p7 }
  0x17   : > { %p2034_p10 = pnand %p2336_p9, %p2032_p8 }
  0x19   : > { %p2035_p11 = pneg %p2034_p10 }
  0x1b   : > { %p2040_p13 = pnand %p2038_p12, %p2035_p11 }
  0x1d   : > { %2043 = shalt.err (!%p2040_p13)
}
  0x1e   : > { %s2044_s18 = scalar_lea.vmem %s2314_s16, 512  ;;  %p2052_p6 = scmp.lt.s32.totalorder %s2314_s16, %s2314_s16 }
  0x1f   : > { %p2045_p0 = scmp.ne.s32.totalorder %s2314_s16, %s2044_s18  ;;  %p2053_p1 = scmp.lt.s32.totalorder %s2044_s18, %s2044_s18 }
  0x21   : > { %p2047_p2 = pnand %p2045_p0, %p2336_p9  ;;  %p2054_p8 = por %p2053_p1, %p2052_p6 }
  0x23   : > { %p2048_p3 = pneg %p2047_p2 }
  0x25   : > { %p2055_p10 = pnand %p2054_p8, %p2048_p3 }
  0x27   : > { %2058 = shalt.err (!%p2055_p10)
}
  0x28   : > { %s2208_s20 = smov 128   ;;  %s2209_s22 = smov 8  }
  0x29   : > { %1946 = dma.hbm_to_vmem [thread:$0]  (!%p2320_p7), %s2712_s3, 512, %s2314_s16, [#allocation5], %s2208_s20, %s2208_s20, %s2209_s22  }
  0x2a   : > { %s2059_s11 = scalar_lea.hbm %s2713_s4, 512 }
  0x2b   : > { %p2060_p1 = scmp.ne.s32.totalorder %s2713_s4, %s2059_s11  ;;  %p2066_p13 = scmp.lt.u32.totalorder %s2059_s11, %s2713_s4 }
  0x2d   : > { %p2062_p11 = pnand %p2060_p1, %p2336_p9 }
  0x2f   : > { %p2063_p12 = pneg %p2062_p11 }
  0x31   : > { %p2068_p0 = pnand %p2066_p13, %p2063_p12 }
  0x33   : > { %2071 = shalt.err (!%p2068_p0)
}
  0x34   : > { %s2072_s16 = scalar_lea.vmem %s2324_s19, 512  ;;  %p2080_p8 = scmp.lt.s32.totalorder %s2324_s19, %s2324_s19 }
  0x35   : > { %p2073_p2 = scmp.ne.s32.totalorder %s2324_s19, %s2072_s16  ;;  %p2081_p10 = scmp.lt.s32.totalorder %s2072_s16, %s2072_s16 }
  0x37   : > { %p2075_p3 = pnand %p2073_p2, %p2336_p9  ;;  %p2082_p1 = por %p2081_p10, %p2080_p8 }
  0x39   : > { %p2076_p6 = pneg %p2075_p3 }
  0x3b   : > { %p2083_p11 = pnand %p2082_p1, %p2076_p6 }
  0x3d   : > { %2086 = shalt.err (!%p2083_p11)
}
  0x3e   : > { %1949 = dma.hbm_to_vmem [thread:$0]  (!%p2320_p7), %s2713_s4, 512, %s2324_s19, [#allocation5], %s2208_s20, %s2208_s20, %s2209_s22  }
  0x3f   : > { %s2087_s25 = scalar_lea.hbm %s2714_s5, 512 }
  0x40   : > { %p2088_p12 = scmp.ne.s32.totalorder %s2714_s5, %s2087_s25  ;;  %p2094_p2 = scmp.lt.u32.totalorder %s2087_s25, %s2714_s5 }
  0x42   : > { %p2090_p13 = pnand %p2088_p12, %p2336_p9 }
  0x44   : > { %p2091_p0 = pneg %p2090_p13 }
  0x46   : > { %p2096_p3 = pnand %p2094_p2, %p2091_p0 }
  0x48   : > { %2099 = shalt.err (!%p2096_p3)
}
  0x49   : > { %s2100_s16 = scalar_lea.vmem %s303_s21, 512  ;;  %p2108_p1 = scmp.lt.s32.totalorder %s303_s21, %s303_s21 }
  0x4a   : > { %p2101_p6 = scmp.ne.s32.totalorder %s303_s21, %s2100_s16  ;;  %p2109_p11 = scmp.lt.s32.totalorder %s2100_s16, %s2100_s16 }
  0x4c   : > { %p2103_p8 = pnand %p2101_p6, %p2336_p9  ;;  %p2110_p4 = por %p2109_p11, %p2108_p1 }
  0x4e   : > { %p2104_p10 = pneg %p2103_p8 }
  0x50   : > { %p2111_p5 = pnand %p2110_p4, %p2104_p10 }
  0x52   : > { %2114 = shalt.err (!%p2111_p5)
}
  0x53   : > { %1952 = dma.hbm_to_vmem [thread:$0]  (!%p2320_p7), %s2714_s5, 512, %s303_s21, [#allocation8], %s2208_s20, %s2208_s20, %s2209_s22  }
  0x54   : > { %s36_s27 = sadd.s32 1, %s2199_s9  ;;  %p52_p4 = scmp.ne.s32.totalorder %s2191_s29, %s2187_s28 }
  0x55   : > { %p38_p5 = scmp.ge.s32.totalorder %s36_s27, 2  ;;  %p53_p9 = scmp.eq.s32.totalorder %s2203_s10, 0 }
  0x56   : > { %s45_s17 = sadd.s32 1, %s2191_s29  ;;  %s316_s8 = sand.u32 1, %s2191_s29  }
  0x57   : > { %s2742_s27 = smov (%p38_p5, %s36_s27), 0  ;;  %p54_p12 = por %p53_p9, %p52_p4 }
  0x58   : > { %p1960_p13 = scmp.lt.s32.totalorder %s2203_s10, 2  ;;  %s40_s23 = ssub.s32 %s2199_s9, %s2742_s27 }
  0x59   : > { %s1816_s24 = sshll.u32 %s316_s8, 3  ;;  %p43_p0 = scmp.eq.s32.totalorder %s40_s23, 0 }
  0x5a   : > { %s1817_s25 = sshll.u32 %s2199_s9, 7  ;;  %s320_s26 = scalar_lea.vmem [#allocation2], %s1816_s24 }
  0x5b   : > { %s328_s11 = sshll.u32 %s320_s26, 4  ;;  %s2426_s22 = scalar_lea.hbm %s2709_s0, %s1817_s25  ;;  %s2428_s11 = int_to_ptr.vmem [resolvable:$true] %s328_s11 }
  0x5c   : > { %s2421_s15 = scalar_select %p43_p0, %s2191_s29, %s45_s17  }
  0x5d   : > { %p2430_p7 = pnand %p1960_p13, %p54_p12  ;;  %s317_s16 = scalar_lea.sflag [#allocation3], %s316_s8 }
  0x5e   : > { %s2115_s19 = scalar_lea.hbm %s2426_s22, 128  ;;  %s2120_s23 = scalar_lea.hbm %s2709_s0, 256 }
  0x5f   : > { %p2116_p2 = scmp.ne.s32.totalorder %s2426_s22, %s2115_s19  ;;  %p2117_p3 = pneg %p2430_p7 }
  0x60   : > { %p2121_p10 = scmp.lt.u32.totalorder %s2426_s22, %s2709_s0  ;;  %p2122_p1 = scmp.lt.u32.totalorder %s2120_s23, %s2115_s19 }
  0x61   : > { %p2118_p6 = pnand %p2117_p3, %p2116_p2  ;;  %p2124_p4 = scmp.lt.u32.totalorder %s2115_s19, %s2426_s22 }
  0x62   : > { %p2123_p11 = por %p2122_p1, %p2121_p10 }
  0x63   : > { %p2119_p8 = pneg %p2118_p6 }
  0x64   : > { %p2125_p5 = por %p2124_p4, %p2123_p11 }
  0x66   : > { %p2126_p9 = pnand %p2125_p5, %p2119_p8 }
  0x68   : > { %2129 = shalt.err (!%p2126_p9)
}
  0x69   : > { %s2130_s8 = scalar_lea.vmem %s2428_s11, 128  ;;  %s2210_s26 = smov [#allocation2]  }
  0x6a   : > { %p2131_p12 = scmp.ne.s32.totalorder %s2428_s11, %s2130_s8  ;;  %s2135_s21 = sshll.u32 %s2210_s26, 4  ;;  %s2136_s21 = int_to_ptr.vmem [resolvable:$false] %s2135_s21 }
  0x6b   : > { %s2137_s20 = scalar_lea.vmem %s2136_s21, 256  ;;  %p2138_p2 = scmp.lt.s32.totalorder %s2428_s11, %s2136_s21 }
  0x6c   : > { %p2133_p13 = pnand %p2131_p12, %p2117_p3  ;;  %p2139_p6 = scmp.lt.s32.totalorder %s2137_s20, %s2130_s8 }
  0x6e   : > { %p2134_p0 = pneg %p2133_p13  ;;  %p2140_p10 = por %p2139_p6, %p2138_p2 }
  0x70   : > { %p2141_p1 = pnand %p2140_p10, %p2134_p0 }
  0x72   : > { %2144 = shalt.err (!%p2141_p1)
}
  0x73   : > { %1956 = dma.hbm_to_vmem [thread:$0]  (!%p2430_p7), %s2426_s22, 128, %s2428_s11, %s317_s16  }
  0x74   : > { %p2730_p8 = scmp.ne.s32.totalorder %s2726_s14, 0 }
  0x75   : > { %s339_s19 = sand.u32 (!%p2730_p8), 1, %s2187_s28   ;;  %p2731_p3 = scmp.ne.s32.totalorder (!%p2730_p8), %s2725_s13, 0 }
  0x76   : > { %337 = sbr.rel (%p2730_p8) target bundleno = 848 (0x350), region = 44  ;;  %s1819_s6 = sshll.u32 (!%p2730_p8), %s339_s19, 3 }
  0x77   : > { %s340_s17 = scalar_lea.sflag (!%p2730_p8), [#allocation3], %s339_s19  ;;  %s343_s23 = scalar_lea.vmem (!%p2730_p8), [#allocation2], %s1819_s6 }
  0x7d   : > { %2170 = dma.done.wait (%p2731_p3), %s340_s17, 128  }
  0x7e   : > { %2172 = vsyncadd (%p2731_p3), %s340_s17, 4294967168  ;;  %p2732_p11 = scmp.ne.s32.totalorder %s2724_s12, 0 }
  0x80   : > { %2174 = dma.done.wait (%p2732_p11), [#allocation5], 1024  }
  0x81   : > { %2176 = vsyncadd (%p2732_p11), [#allocation5], 4294966272 }
  0x82   : > { %2178 = dma.done.wait (%p2732_p11), [#allocation8], 512  }
  0x83   : > { %2180 = vsyncadd (%p2732_p11), [#allocation8], 4294966784  ;;  %vm432_vm0 = vcmask 261120   ;;  %v431_v0 = vld [vmem:[%s343_s23] sm:$0xff]  ;;  %v463_v7 = vld [vmem:[#allocation4] sm:$0xff]  ;;  %v2211_v10 = vmov 0.0|0.0   ;;  %v716_v45 = vlaneseq }
  0x84   : > { %v433_v1 = vsel %vm432_vm0, %v431_v0, 0.0  ;;  %v464_v8 = vld [vmem:[#allocation4 + $0x8] sm:$0xff]  ;;  %v541_v9 = vld [vmem:[#allocation6] sm:$0xff]  ;;  %1911 = vmatprep.subr.bf16.mxu0 %v2211_v10  ;;  %1917 = vmatprep.subr.bf16.mxu1 %v2211_v10  ;;  %v465_v13 = vld [vmem:[#allocation4 + $0x10] sm:$0xff]  ;;  %vm2212_vm1 = vmmov 0   ;;  %v2213_v18 = vmov 0.0  }
  0x85   : > { %434 = vadd.xlane.f32.xlu0 %v433_v1  ;;  %v1912_v11 = vpack.c.bf16 %v464_v8, %v463_v7  ;;  %v542_v12 = vld [vmem:[#allocation6 + $0x8] sm:$0xff]  ;;  %v466_v14 = vld [vmem:[#allocation4 + $0x18] sm:$0xff]  ;;  %v543_v16 = vld [vmem:[#allocation6 + $0x10] sm:$0xff]  ;;  %1886 = vmatprep.mubr.msk.f32.mxu0 %vm2212_vm1, %v2213_v18  ;;  %s2214_s22 = smov 116   ;;  %s2215_s18 = smov 124   ;;  %v717_v49 = vshrl.u32 %v716_v45, 7 }
  0x86   : > { %v1918_v15 = vpack.c.bf16 %v542_v12, %v541_v9  ;;  %v544_v17 = vld [vmem:[#allocation6 + $0x18] sm:$0xff]  ;;  %1897 = vmatprep.mubr.msk.f32.mxu1 %vm2212_vm1, %v2213_v18  ;;  %v1915_v19 = vpack.c.bf16 %v466_v14, %v465_v13  ;;  %v1829_v25 = vld [vmem:[%s2710_s1] ss:$0 sm:$0xff]  ;;  %v615_v27 = vld [vmem:[#allocation7] sm:$0xff]  ;;  %s2216_s16 = smov 108   ;;  %s2217_s24 = smov 120  }
  0x87   : > { %1913 = vmatpush3.bf16.msra.mxu0 %v1912_v11  ;;  %v1921_v20 = vpack.c.bf16 %v544_v17, %v543_v16  ;;  %v616_v28 = vld [vmem:[#allocation7 + $0x8] sm:$0xff]  ;;  %v1830_v29 = vld [vmem:[%s2711_s2] ss:$0 sm:$0xff]  ;;  %v618_v34 = vld [vmem:[#allocation7 + $0x18] sm:$0xff]  ;;  %s2218_s25 = smov 100   ;;  %s2219_s8 = smov 112  }
  0x88   : > { %1919 = vmatpush3.bf16.msra.mxu1 %v1918_v15  ;;  %1914 = vmatprep.subr.bf16.mxu0 %v2211_v10  ;;  %v1924_v31 = vpack.c.bf16 %v616_v28, %v615_v27  ;;  %v617_v33 = vld [vmem:[#allocation7 + $0x10] sm:$0xff]  ;;  %s2220_s26 = smov 104   ;;  %v2221_v43 = vmov 1983009808   ;;  %v2222_v46 = vmov 1934713408  }
  0x89   : > { %1920 = vmatprep.subr.bf16.mxu1 %v2211_v10  ;;  %v1927_v35 = vpack.c.bf16 %v618_v34, %v617_v33  ;;  %v714_v44 = vunpack.c.l.s4 %v2221_v43  ;;  %v778_v47 = vunpack.c.l.s4 %v2222_v46  ;;  %p407_p7 = scmp.lt.s32.totalorder %s2195_s30, 1  ;;  %vm983_vm2 = vcmask 31744   ;;  %s2733_s23 = sld [smem:[#allocation12_spill]] }
  0x8a   : > { %s2734_s11 = sld [smem:[#allocation13_spill]] }
  0x8b   : > { %1916 = vmatpush3.bf16.msra.mxu0 %v1915_v19  ;;  %v715_v48 = vunpack.c.0.s8 %v714_v44  ;;  %v779_v52 = vunpack.c.0.s8 %v778_v47  ;;  %s2744_s30 = smov (!%p407_p7, %s2195_s30), 1 }
  0x8c   : > { %1922 = vmatpush3.bf16.msra.mxu1 %v1921_v20  ;;  %1923 = vmatprep.subr.bf16.mxu0 %v2211_v10  ;;  %s2531_s21 = sshll.u32 %s2744_s30, 6 }
  0x8d   : > { %v2509_v53 = vsub.s32 %v715_v48, %v717_v49  ;;  %v2511_v60 = vsub.s32 %v779_v52, %v717_v49  ;;  %s2541_s19 = scalar_lea.vmem %s2716_s7, %s2531_s21 }
  0x8f   : > { %s2601_s12 = scalar_lea.vmem %s2733_s23, %s2531_s21 }
 0x112   : > { %v435_v2 = vpop.xlane.xlu0 %434 }
 0x113   : > { %v437_v3 = vmul.f32 0.03125, %v435_v2 }
 0x115   : > { %v438_v4 = vsub.f32 %v431_v0, %v437_v3 }
 0x117   : > { %v439_v5 = vmul.f32 %v438_v4, %v438_v4 }
 0x119   : > { %v440_v6 = vsel %vm432_vm0, %v439_v5, 0.0 }
 0x11a   : > { %441 = vadd.xlane.f32.xlu0 %v440_v6 }
 0x1a7   : > { %v442_v21 = vpop.xlane.xlu0 %441 }
 0x1a8   : > { %v443_v22 = vmul.f32 0.03125, %v442_v21 }
 0x1aa   : > { %v444_v23 = vadd.f32 1e-05, %v443_v22 }
 0x1ac   : > { %2029 = vrsqrt.f32 %v444_v23 }
 0x1b6   : > { %v2030_v24 = vpop.eup %2029 }
 0x1b7   : > { %v446_v26 = vmul.f32 %v2030_v24, %v438_v4 }
 0x1b9   : > { %v454_v30 = vmul.f32 %v1829_v25, %v446_v26 }
 0x1bb   : > { %v462_v32 = vadd.f32 %v1830_v29, %v454_v30 }
 0x1bd   : > { %1887 = vmatmul.mubr.msk.f32.vlgmr.msra.gmra.mrb[0].mxu0 %vm432_vm0, %v462_v32  ;;  %1898 = vmatmul.mubr.msk.f32.vlgmr.msra.gmra.mrb[0].mxu1 %vm432_vm0, %v462_v32 }
 0x1be   : > { %1925 = vmatpush3.bf16.msra.mxu0 %v1924_v31  ;;  %1908 = vmatprep.mubr.msk.f32.mxu0 %vm2212_vm1, %v2213_v18 }
 0x1bf   : > { %1926 = vmatprep.subr.bf16.mxu0 %v2211_v10 }
 0x1c2   : > { %1928 = vmatpush3.bf16.msra.mxu0 %v1927_v35 }
 0x1c5   : > { %1909 = vmatmul.mubr.msk.f32.vlgmr.msra.gmra.mrb[2].mxu0 %vm432_vm0, %v462_v32 }
 0x290   : > { %v536_v36 = vpop.f32.mrb[0].mxu0  ;;  %v611_v37 = vpop.f32.mrb[0].mxu1 }
 0x291   : > { %999 = vrot.lane.b32.xlu0 %v611_v37, %s2214_s22  ;;  %993 = vrot.lane.b32.xlu1 %v611_v37, %s2215_s18  ;;  %v1888_v38 = vpop.f32.mrb[1].mxu0  ;;  %v1899_v39 = vpop.f32.mrb[1].mxu1  ;;  %v2491_v42 = vmul.f32 0.5, %v536_v36 }
 0x295   : > { %1005 = vrot.lane.b32.xlu0 %v611_v37, %s2216_s16  ;;  %996 = vrot.lane.b32.xlu1 %v611_v37, %s2217_s24 }
 0x298   : > { %v2489_v40 = vpop.f32.mrb[2].mxu0 }
 0x299   : > { %v1910_v41 = vpop.f32.mrb[3].mxu0  ;;  %1011 = vrot.lane.b32.xlu0 %v611_v37, %s2218_s25  ;;  %1002 = vrot.lane.b32.xlu1 %v611_v37, %s2219_s8 }
 0x29d   : > { %1008 = vrot.lane.b32.xlu1 %v611_v37, %s2220_s26  ;;  %696 = vrot.lane.b32.xlu0 %v2491_v42, %s2214_s22 }
 0x2a1   : > { %690 = vrot.lane.b32.xlu1 %v2491_v42, %s2215_s18  ;;  %1298 = vrot.lane.b32.xlu0 %v2489_v40, %s2217_s24 }
 0x2a5   : > { %693 = vrot.lane.b32.xlu1 %v2491_v42, %s2217_s24  ;;  %1304 = vrot.lane.b32.xlu0 %v2489_v40, %s2219_s8 }
 0x2a9   : > { %699 = vrot.lane.b32.xlu1 %v2491_v42, %s2219_s8  ;;  %1310 = vrot.lane.b32.xlu0 %v2489_v40, %s2220_s26 }
 0x2ad   : > { %702 = vrot.lane.b32.xlu1 %v2491_v42, %s2216_s16 }
 0x2b1   : > { %705 = vrot.lane.b32.xlu1 %v2491_v42, %s2220_s26 }
 0x2b5   : > { %708 = vrot.lane.b32.xlu1 %v2491_v42, %s2218_s25 }
 0x2b9   : > { %1295 = vrot.lane.b32.xlu1 %v2489_v40, %s2215_s18 }
 0x2bd   : > { %1301 = vrot.lane.b32.xlu1 %v2489_v40, %s2214_s22  ;;  %s2661_s22 = scalar_lea.vmem %s2734_s11, %s2531_s21 }
 0x2c1   : > { %1307 = vrot.lane.b32.xlu1 %v2489_v40, %s2216_s16 }
 0x2c5   : > { %1313 = vrot.lane.b32.xlu1 %v2489_v40, %s2218_s25 }
 0x303   : > { %v1000_v50 = vpop.permute.xlu0 %999  ;;  %v994_v51 = vpop.permute.xlu1 %993 }
 0x304   : > { %v1030_v54 = vcombine.low %v994_v51, %v1000_v50  ;;  %v1031_v55 = vcombine.high %v994_v51, %v1000_v50 }
 0x306   : > { %v1038_v61 = vrot.slane %v1030_v54, %v2509_v53  ;;  %v1045_v62 = vrot.slane %v1031_v55, %v2509_v53 }
 0x307   : > { %v1006_v56 = vpop.permute.xlu0 %1005  ;;  %v997_v57 = vpop.permute.xlu1 %996 }
 0x308   : > { %v1014_v58 = vcombine.low %v611_v37, %v997_v57  ;;  %v1015_v59 = vcombine.high %v611_v37, %v997_v57 }
 0x30a   : > { %v1022_v63 = vrot.slane %v1014_v58, %v2509_v53  ;;  %v1029_v0 = vrot.slane %v1015_v59, %v2509_v53 }
 0x30b   : > { %v1003_v1 = vpop.permute.xlu1 %1002  ;;  %v1012_v6 = vpop.permute.xlu0 %1011 }
 0x30c   : > { %v1078_v2 = vcombine.low %v1022_v63, %v1038_v61  ;;  %v1079_v3 = vcombine.high %v1022_v63, %v1038_v61  ;;  %v1094_v4 = vcombine.low %v1029_v0, %v1045_v62  ;;  %v1095_v5 = vcombine.high %v1029_v0, %v1045_v62 }
 0x30d   : > { %v1062_v11 = vcombine.low %v1006_v56, %v1012_v6  ;;  %v1063_v12 = vcombine.high %v1006_v56, %v1012_v6 }
 0x30e   : > { %v1086_v7 = vrot.slane %v1078_v2, %v2511_v60  ;;  %v1093_v8 = vrot.slane %v1079_v3, %v2511_v60  ;;  %v1102_v9 = vrot.slane %v1094_v4, %v2511_v60  ;;  %v1109_v10 = vrot.slane %v1095_v5, %v2511_v60 }
 0x30f   : > { %v1009_v13 = vpop.permute.xlu1 %1008  ;;  %v1070_v24 = vrot.slane %v1062_v11, %v2509_v53  ;;  %v1077_v25 = vrot.slane %v1063_v12, %v2509_v53  ;;  %v697_v62 = vpop.permute.xlu0 %696 }
 0x310   : > { %v1842_v14 = vcombine.low %v1086_v7, %v1093_v8  ;;  %v1844_v15 = vcombine.high %v1086_v7, %v1093_v8  ;;  %v1846_v16 = vcombine.low %v1102_v9, %v1109_v10  ;;  %v1848_v17 = vcombine.high %v1102_v9, %v1109_v10 }
 0x311   : > { %v1046_v18 = vcombine.low %v1003_v1, %v1009_v13  ;;  %v1047_v19 = vcombine.high %v1003_v1, %v1009_v13 }
 0x312   : > { %v1158_v20 = vrot.slane %v1842_v14, %v2509_v53  ;;  %v1174_v21 = vrot.slane %v1844_v15, %v2509_v53  ;;  %v1190_v22 = vrot.slane %v1846_v16, %v2509_v53  ;;  %v1206_v23 = vrot.slane %v1848_v17, %v2509_v53 }
 0x313   : > { %v1054_v26 = vrot.slane %v1046_v18, %v2509_v53  ;;  %v1061_v27 = vrot.slane %v1047_v19, %v2509_v53  ;;  %v691_v28 = vpop.permute.xlu1 %690 }
 0x314   : > { %v1214_v29 = vcombine.low %v1158_v20, %v1174_v21  ;;  %v1215_v30 = vcombine.high %v1158_v20, %v1174_v21  ;;  %v1246_v31 = vcombine.low %v1190_v22, %v1206_v23  ;;  %v1247_v32 = vcombine.high %v1190_v22, %v1206_v23 }
 0x315   : > { %v1110_v33 = vcombine.low %v1054_v26, %v1070_v24  ;;  %v1111_v34 = vcombine.high %v1054_v26, %v1070_v24  ;;  %v1126_v35 = vcombine.low %v1061_v27, %v1077_v25  ;;  %v1127_v36 = vcombine.high %v1061_v27, %v1077_v25  ;;  %v1299_v24 = vpop.permute.xlu0 %1298 }
 0x316   : > { %v1222_v37 = vrot.slane %v1214_v29, %v2511_v60  ;;  %v1229_v38 = vrot.slane %v1215_v30, %v2511_v60  ;;  %v1254_v39 = vrot.slane %v1246_v31, %v2511_v60  ;;  %v1261_v41 = vrot.slane %v1247_v32, %v2511_v60 }
 0x317   : > { %v1118_v43 = vrot.slane %v1110_v33, %v2511_v60  ;;  %v1125_v44 = vrot.slane %v1111_v34, %v2511_v60  ;;  %v1134_v45 = vrot.slane %v1126_v35, %v2511_v60  ;;  %v1141_v46 = vrot.slane %v1127_v36, %v2511_v60  ;;  %v694_v47 = vpop.permute.xlu1 %693 }
 0x318   : > { %v1278_v48 = vcombine.low %v1222_v37, %v1254_v39  ;;  %v1279_v49 = vcombine.high %v1222_v37, %v1254_v39  ;;  %v1280_v50 = vcombine.low %v1229_v38, %v1261_v41  ;;  %v1281_v51 = vcombine.high %v1229_v38, %v1261_v41 }
 0x319   : > { %v1843_v52 = vcombine.low %v1118_v43, %v1125_v44  ;;  %v1845_v54 = vcombine.high %v1118_v43, %v1125_v44  ;;  %v1847_v55 = vcombine.low %v1134_v45, %v1141_v46  ;;  %v1849_v56 = vcombine.high %v1134_v45, %v1141_v46  ;;  %v2587_v45 = vpop.permute.xlu0 %1304 }
 0x31a   : > { %1286 = vst.msk [vmem:[%s2541_s19] sm:$0xff] %vm983_vm2, %v1278_v48  ;;  %1287 = vst.msk [vmem:[%s2541_s19 + $0x8] sm:$0xff] %vm983_vm2, %v1279_v49  ;;  %v727_v0 = vcombine.low %v691_v28, %v697_v62  ;;  %v728_v1 = vcombine.high %v691_v28, %v697_v62  ;;  %v711_v6 = vcombine.low %v2491_v42, %v694_v47 }
 0x31b   : > { %1288 = vst.msk [vmem:[%s2541_s19 + $0x10] sm:$0xff] %vm983_vm2, %v1280_v50  ;;  %1289 = vst.msk [vmem:[%s2541_s19 + $0x18] sm:$0xff] %vm983_vm2, %v1281_v51  ;;  %v1165_v57 = vrot.slane %v1843_v52, %v2509_v53  ;;  %v1181_v58 = vrot.slane %v1845_v54, %v2509_v53  ;;  %v1197_v59 = vrot.slane %v1847_v55, %v2509_v53  ;;  %v700_v63 = vpop.permute.xlu1 %699 }
 0x31c   : > { %v1213_v61 = vrot.slane %v1849_v56, %v2509_v53  ;;  %v712_v7 = vcombine.high %v2491_v42, %v694_v47  ;;  %v735_v13 = vrot.slane %v727_v0, %v2509_v53  ;;  %v742_v14 = vrot.slane %v728_v1, %v2509_v53 }
 0x31d   : > { %v1230_v2 = vcombine.low %v1165_v57, %v1181_v58  ;;  %v1231_v3 = vcombine.high %v1165_v57, %v1181_v58  ;;  %v719_v15 = vrot.slane %v711_v6, %v2509_v53  ;;  %v1316_v43 = vcombine.low %v2489_v40, %v1299_v24  ;;  %v2603_v6 = vpop.permute.xlu0 %1310 }
 0x31e   : > { %v1262_v4 = vcombine.low %v1197_v59, %v1213_v61  ;;  %v1263_v5 = vcombine.high %v1197_v59, %v1213_v61  ;;  %v726_v42 = vrot.slane %v712_v7, %v2509_v53  ;;  %v1317_v44 = vcombine.high %v2489_v40, %v1299_v24 }
 0x31f   : > { %v1238_v8 = vrot.slane %v1230_v2, %v2511_v60  ;;  %v1245_v9 = vrot.slane %v1231_v3, %v2511_v60  ;;  %v703_v12 = vpop.permute.xlu1 %702  ;;  %v775_v20 = vcombine.low %v719_v15, %v735_v13  ;;  %v776_v21 = vcombine.high %v719_v15, %v735_v13 }
 0x320   : > { %v1270_v10 = vrot.slane %v1262_v4, %v2511_v60  ;;  %v1277_v11 = vrot.slane %v1263_v5, %v2511_v60  ;;  %v791_v22 = vcombine.low %v726_v42, %v742_v14  ;;  %v792_v23 = vcombine.high %v726_v42, %v742_v14 }
 0x321   : > { %v783_v26 = vrot.slane %v775_v20, %v2511_v60  ;;  %v790_v27 = vrot.slane %v776_v21, %v2511_v60  ;;  %v1331_v13 = vrot.slane %v1317_v44, %v2509_v53  ;;  %v1349_v20 = vcombine.high %v2587_v45, %v2603_v6 }
 0x322   : > { %v1282_v16 = vcombine.low %v1238_v8, %v1270_v10  ;;  %v1283_v17 = vcombine.high %v1238_v8, %v1270_v10  ;;  %v1284_v18 = vcombine.low %v1245_v9, %v1277_v11  ;;  %v1285_v19 = vcombine.high %v1245_v9, %v1277_v11 }
 0x323   : > { %v706_v25 = vpop.permute.xlu1 %705  ;;  %v799_v28 = vrot.slane %v791_v22, %v2511_v60  ;;  %v806_v29 = vrot.slane %v792_v23, %v2511_v60  ;;  %v1834_v30 = vcombine.low %v783_v26, %v790_v27  ;;  %v1836_v31 = vcombine.high %v783_v26, %v790_v27 }
 0x324   : > { %1290 = vst.msk [vmem:[%s2541_s19 + $0x20] sm:$0xff] %vm983_vm2, %v1282_v16  ;;  %1291 = vst.msk [vmem:[%s2541_s19 + $0x28] sm:$0xff] %vm983_vm2, %v1283_v17  ;;  %v743_v34 = vcombine.low %v700_v63, %v706_v25  ;;  %v744_v35 = vcombine.high %v700_v63, %v706_v25 }
 0x325   : > { %1292 = vst.msk [vmem:[%s2541_s19 + $0x30] sm:$0xff] %vm983_vm2, %v1284_v18  ;;  %1293 = vst.msk [vmem:[%s2541_s19 + $0x38] sm:$0xff] %vm983_vm2, %v1285_v19  ;;  %v1838_v32 = vcombine.low %v799_v28, %v806_v29  ;;  %v1840_v33 = vcombine.high %v799_v28, %v806_v29  ;;  %v855_v37 = vrot.slane %v1834_v30, %v2509_v53 }
 0x326   : > { %v871_v38 = vrot.slane %v1836_v31, %v2509_v53  ;;  %v751_v52 = vrot.slane %v743_v34, %v2509_v53  ;;  %v758_v54 = vrot.slane %v744_v35, %v2509_v53  ;;  %v1348_v19 = vcombine.low %v2587_v45, %v2603_v6 }
 0x327   : > { %v709_v36 = vpop.permute.xlu1 %708  ;;  %v887_v39 = vrot.slane %v1838_v32, %v2509_v53  ;;  %v903_v41 = vrot.slane %v1840_v33, %v2509_v53 }
 0x328   : > { %v759_v46 = vcombine.low %v703_v12, %v709_v36  ;;  %v760_v47 = vcombine.high %v703_v12, %v709_v36  ;;  %v911_v48 = vcombine.low %v855_v37, %v871_v38  ;;  %v912_v49 = vcombine.high %v855_v37, %v871_v38 }
 0x329   : > { %v943_v50 = vcombine.low %v887_v39, %v903_v41  ;;  %v944_v51 = vcombine.high %v887_v39, %v903_v41  ;;  %v1324_v12 = vrot.slane %v1316_v43, %v2509_v53 }
 0x32a   : > { %v767_v55 = vrot.slane %v759_v46, %v2509_v53  ;;  %v774_v56 = vrot.slane %v760_v47, %v2509_v53  ;;  %v919_v40 = vrot.slane %v911_v48, %v2511_v60  ;;  %v926_v58 = vrot.slane %v912_v49, %v2511_v60 }
 0x32b   : > { %v1296_v57 = vpop.permute.xlu1 %1295  ;;  %v951_v59 = vrot.slane %v943_v50, %v2511_v60  ;;  %v958_v61 = vrot.slane %v944_v51, %v2511_v60 }
 0x32c   : > { %v807_v62 = vcombine.low %v751_v52, %v767_v55  ;;  %v808_v63 = vcombine.high %v751_v52, %v767_v55  ;;  %v823_v0 = vcombine.low %v758_v54, %v774_v56  ;;  %v824_v1 = vcombine.high %v758_v54, %v774_v56 }
 0x32d   : > { %v975_v2 = vcombine.low %v919_v40, %v951_v59  ;;  %v976_v3 = vcombine.high %v919_v40, %v951_v59  ;;  %v977_v4 = vcombine.low %v926_v58, %v958_v61  ;;  %v978_v5 = vcombine.high %v926_v58, %v958_v61 }
 0x32e   : > { %v815_v7 = vrot.slane %v807_v62, %v2511_v60  ;;  %v822_v8 = vrot.slane %v808_v63, %v2511_v60  ;;  %v831_v9 = vrot.slane %v823_v0, %v2511_v60  ;;  %v838_v10 = vrot.slane %v824_v1, %v2511_v60 }
 0x32f   : > { %v1302_v11 = vpop.permute.xlu1 %1301  ;;  %984 = vst.msk [vmem:[%s2601_s12] sm:$0xff] %vm983_vm2, %v975_v2  ;;  %985 = vst.msk [vmem:[%s2601_s12 + $0x8] sm:$0xff] %vm983_vm2, %v976_v3  ;;  %v1356_v2 = vrot.slane %v1348_v19, %v2509_v53  ;;  %v1363_v3 = vrot.slane %v1349_v20, %v2509_v53 }
 0x330   : > { %986 = vst.msk [vmem:[%s2601_s12 + $0x10] sm:$0xff] %vm983_vm2, %v977_v4  ;;  %987 = vst.msk [vmem:[%s2601_s12 + $0x18] sm:$0xff] %vm983_vm2, %v978_v5  ;;  %v1332_v14 = vcombine.low %v1296_v57, %v1302_v11  ;;  %v1333_v15 = vcombine.high %v1296_v57, %v1302_v11  ;;  %v1835_v42 = vcombine.low %v815_v7, %v822_v8 }
 0x331   : > { %v1837_v16 = vcombine.high %v815_v7, %v822_v8  ;;  %v1839_v17 = vcombine.low %v831_v9, %v838_v10  ;;  %v1841_v18 = vcombine.high %v831_v9, %v838_v10 }
 0x332   : > { %v1340_v21 = vrot.slane %v1332_v14, %v2509_v53  ;;  %v1347_v22 = vrot.slane %v1333_v15, %v2509_v53  ;;  %v862_v23 = vrot.slane %v1835_v42, %v2509_v53 }
 0x333   : > { %v878_v24 = vrot.slane %v1837_v16, %v2509_v53  ;;  %v894_v25 = vrot.slane %v1839_v17, %v2509_v53  ;;  %v910_v26 = vrot.slane %v1841_v18, %v2509_v53  ;;  %v1308_v27 = vpop.permute.xlu1 %1307 }
 0x334   : > { %v1380_v28 = vcombine.low %v1324_v12, %v1340_v21  ;;  %v1381_v29 = vcombine.high %v1324_v12, %v1340_v21  ;;  %v1396_v30 = vcombine.low %v1331_v13, %v1347_v22  ;;  %v1397_v31 = vcombine.high %v1331_v13, %v1347_v22 }
 0x335   : > { %v927_v32 = vcombine.low %v862_v23, %v878_v24  ;;  %v928_v33 = vcombine.high %v862_v23, %v878_v24  ;;  %v959_v34 = vcombine.low %v894_v25, %v910_v26  ;;  %v960_v35 = vcombine.high %v894_v25, %v910_v26 }
 0x336   : > { %v1388_v36 = vrot.slane %v1380_v28, %v2511_v60  ;;  %v1395_v37 = vrot.slane %v1381_v29, %v2511_v60  ;;  %v1404_v38 = vrot.slane %v1396_v30, %v2511_v60  ;;  %v1411_v39 = vrot.slane %v1397_v31, %v2511_v60 }
 0x337   : > { %v935_v41 = vrot.slane %v927_v32, %v2511_v60  ;;  %v942_v43 = vrot.slane %v928_v33, %v2511_v60  ;;  %v967_v44 = vrot.slane %v959_v34, %v2511_v60  ;;  %v974_v45 = vrot.slane %v960_v35, %v2511_v60  ;;  %v1314_v50 = vpop.permute.xlu1 %1313 }
 0x338   : > { %v1850_v46 = vcombine.low %v1388_v36, %v1395_v37  ;;  %v1852_v47 = vcombine.high %v1388_v36, %v1395_v37  ;;  %v1854_v48 = vcombine.low %v1404_v38, %v1411_v39  ;;  %v1856_v49 = vcombine.high %v1404_v38, %v1411_v39 }
 0x339   : > { %v979_v51 = vcombine.low %v935_v41, %v967_v44  ;;  %v980_v52 = vcombine.high %v935_v41, %v967_v44  ;;  %v981_v54 = vcombine.low %v942_v43, %v974_v45  ;;  %v982_v55 = vcombine.high %v942_v43, %v974_v45 }
 0x33a   : > { %v1460_v56 = vrot.slane %v1850_v46, %v2509_v53  ;;  %v1476_v57 = vrot.slane %v1852_v47, %v2509_v53  ;;  %v1492_v40 = vrot.slane %v1854_v48, %v2509_v53  ;;  %v1508_v58 = vrot.slane %v1856_v49, %v2509_v53 }
 0x33b   : > { %988 = vst.msk [vmem:[%s2601_s12 + $0x20] sm:$0xff] %vm983_vm2, %v979_v51  ;;  %989 = vst.msk [vmem:[%s2601_s12 + $0x28] sm:$0xff] %vm983_vm2, %v980_v52  ;;  %v1364_v59 = vcombine.low %v1308_v27, %v1314_v50  ;;  %v1365_v61 = vcombine.high %v1308_v27, %v1314_v50 }
 0x33c   : > { %990 = vst.msk [vmem:[%s2601_s12 + $0x30] sm:$0xff] %vm983_vm2, %v981_v54  ;;  %991 = vst.msk [vmem:[%s2601_s12 + $0x38] sm:$0xff] %vm983_vm2, %v982_v55  ;;  %v1516_v62 = vcombine.low %v1460_v56, %v1476_v57  ;;  %v1517_v63 = vcombine.high %v1460_v56, %v1476_v57  ;;  %v1548_v0 = vcombine.low %v1492_v40, %v1508_v58 }
 0x33d   : > { %v1549_v1 = vcombine.high %v1492_v40, %v1508_v58  ;;  %v1372_v4 = vrot.slane %v1364_v59, %v2509_v53  ;;  %v1379_v5 = vrot.slane %v1365_v61, %v2509_v53 }
 0x33e   : > { %v1524_v6 = vrot.slane %v1516_v62, %v2511_v60  ;;  %v1531_v7 = vrot.slane %v1517_v63, %v2511_v60  ;;  %v1556_v8 = vrot.slane %v1548_v0, %v2511_v60 }
 0x33f   : > { %v1563_v9 = vrot.slane %v1549_v1, %v2511_v60  ;;  %v1412_v10 = vcombine.low %v1356_v2, %v1372_v4  ;;  %v1413_v11 = vcombine.high %v1356_v2, %v1372_v4  ;;  %v1428_v12 = vcombine.low %v1363_v3, %v1379_v5 }
 0x340   : > { %v1429_v13 = vcombine.high %v1363_v3, %v1379_v5  ;;  %v1580_v14 = vcombine.low %v1524_v6, %v1556_v8  ;;  %v1581_v15 = vcombine.high %v1524_v6, %v1556_v8 }
 0x341   : > { %v1582_v42 = vcombine.low %v1531_v7, %v1563_v9  ;;  %v1583_v16 = vcombine.high %v1531_v7, %v1563_v9  ;;  %v1420_v17 = vrot.slane %v1412_v10, %v2511_v60  ;;  %v1427_v18 = vrot.slane %v1413_v11, %v2511_v60 }
 0x342   : > { %v1436_v19 = vrot.slane %v1428_v12, %v2511_v60  ;;  %v1443_v20 = vrot.slane %v1429_v13, %v2511_v60  ;;  %1588 = vst.msk [vmem:[%s2661_s22] sm:$0xff] %vm983_vm2, %v1580_v14  ;;  %1589 = vst.msk [vmem:[%s2661_s22 + $0x8] sm:$0xff] %vm983_vm2, %v1581_v15 }
 0x343   : > { %1590 = vst.msk [vmem:[%s2661_s22 + $0x10] sm:$0xff] %vm983_vm2, %v1582_v42  ;;  %1591 = vst.msk [vmem:[%s2661_s22 + $0x18] sm:$0xff] %vm983_vm2, %v1583_v16  ;;  %v1851_v21 = vcombine.low %v1420_v17, %v1427_v18  ;;  %v1853_v22 = vcombine.high %v1420_v17, %v1427_v18 }
 0x344   : > { %v1855_v23 = vcombine.low %v1436_v19, %v1443_v20  ;;  %v1857_v24 = vcombine.high %v1436_v19, %v1443_v20 }
 0x345   : > { %v1467_v25 = vrot.slane %v1851_v21, %v2509_v53  ;;  %v1483_v26 = vrot.slane %v1853_v22, %v2509_v53 }
 0x346   : > { %v1499_v27 = vrot.slane %v1855_v23, %v2509_v53  ;;  %v1515_v28 = vrot.slane %v1857_v24, %v2509_v53 }
 0x347   : > { %v1532_v29 = vcombine.low %v1467_v25, %v1483_v26  ;;  %v1533_v30 = vcombine.high %v1467_v25, %v1483_v26 }
 0x348   : > { %v1564_v31 = vcombine.low %v1499_v27, %v1515_v28  ;;  %v1565_v32 = vcombine.high %v1499_v27, %v1515_v28 }
 0x349   : > { %v1540_v33 = vrot.slane %v1532_v29, %v2511_v60  ;;  %v1547_v34 = vrot.slane %v1533_v30, %v2511_v60 }
 0x34a   : > { %v1572_v35 = vrot.slane %v1564_v31, %v2511_v60  ;;  %v1579_v36 = vrot.slane %v1565_v32, %v2511_v60 }
 0x34c   : > { %v1584_v37 = vcombine.low %v1540_v33, %v1572_v35  ;;  %v1585_v38 = vcombine.high %v1540_v33, %v1572_v35  ;;  %v1586_v39 = vcombine.low %v1547_v34, %v1579_v36  ;;  %v1587_v41 = vcombine.high %v1547_v34, %v1579_v36 }
 0x34e   : > { %1592 = vst.msk [vmem:[%s2661_s22 + $0x20] sm:$0xff] %vm983_vm2, %v1584_v37  ;;  %1593 = vst.msk [vmem:[%s2661_s22 + $0x28] sm:$0xff] %vm983_vm2, %v1585_v38 }
 0x34f   : > { %1594 = vst.msk [vmem:[%s2661_s22 + $0x30] sm:$0xff] %vm983_vm2, %v1586_v39  ;;  %1595 = vst.msk [vmem:[%s2661_s22 + $0x38] sm:$0xff] %vm983_vm2, %v1587_v41 }
 0x350 PF: > { %s24_s10 = sadd.s32 1, %s2203_s10   ;;  %s2735_s18 = smov %s2742_s27 }
 0x351   : > { %p21_p4 = scmp.ge.s32.totalorder %s24_s10, 4   ;;  %s2736_s27 = smov %s2187_s28 }
 0x352   : > { %s2737_s28 = smov %s2191_s29  ;;  %s2738_s29 = smov %s2421_s15 }
 0x353   : > { %s2739_s30 = smov %s2199_s9  ;;  %s2740_s9 = smov %s2735_s18 }
 0x354   :  { %23 = sbr.rel (!%p21_p4) target bundleno = 9 (0x9), region = 120 }
 0x35b   :  { %1667 = vsyncpa [#allocation3], 1 }
 0x35c   :  { %1669 = vsyncpa [#allocation3 + $0x1], 1 }
 0x35d   :  { %1670 = vsyncpa [#allocation5], 1 }
 0x35e   :  { %1671 = vsyncpa [#allocation8], 1 }

</bundles_post_ra>
